<compile_context>
chip_gen: v7x
topology: tpu7x:2x2x1
jax: 0.10.0
libtpu: 0.0.40
codegen_flags: <defaults>
</compile_context>

<pallas_src>
import jax
import jax.numpy as jnp
from jax.experimental import pallas as pl
from jax.experimental.pallas import tpu as pltpu


_TARGET_BLOCK_BYTES = 1 << 20   # ~1 MiB x-block per grid step
_MAX_NB = 32                    # bound the unrolled per-row MXU-dot count
_MAX_HC = 64                    # bound the unrolled lane-fold add count


def _pick_h_chunk(C, H, W, itemsize, target_bytes):
    """Divisor Hc of H for the H-chunk (reduction) axis.

    Full H when it fits and the fold unroll stays small; otherwise the largest
    divisor whose (C, Hc*W) slab fits `target_bytes` while keeping the
    flattened lane extent Hc*W 128-aligned (BlockSpec rule when Hc < H).
    """
    if H <= _MAX_HC and C * H * W * itemsize <= target_bytes:
        return H
    legal = [d for d in range(1, H + 1)
             if H % d == 0 and d <= _MAX_HC and (d == H or (d * W) % 128 == 0)]
    fitting = [d for d in legal if C * d * W * itemsize <= target_bytes]
    if fitting:
        return max(fitting)
    if legal:
        return min(legal)   # still correct; may exceed the soft byte target
    return H                # no aligned divisor exists: single chunk over H


def _largest_divisor_at_most(n, cap):
    cap = max(1, min(n, cap))
    for d in range(cap, 0, -1):
        if n % d == 0:
            return d
    return 1


def only_distance2ratio_forward(x, weight, bias):
    """x: (N, 29, H, W); weight: (1, 29, 1, 1); bias: (1,). Returns (N, 1, W) f32."""
    N, C, H, W = x.shape
    HW = H * W
    itemsize = jnp.dtype(x.dtype).itemsize

    Hc = _pick_h_chunk(C, H, W, itemsize, _TARGET_BLOCK_BYTES)
    n_h_steps = H // Hc
    Nb = _largest_divisor_at_most(
        N, min(_MAX_NB, max(1, _TARGET_BLOCK_BYTES // (C * Hc * W * itemsize))))
    # v7x megacore: if the (non-splittable) reduction axis is the only
    # multi-step axis, split the batch axis so both TensorCores get work --
    # only worth it when the job is sizeable.
    if (N // Nb == 1 and N > 1 and n_h_steps > 1
            and N * C * H * W * itemsize >= (8 << 20)):
        Nb = _largest_divisor_at_most(N, N // 2)

    # Fuse the 1x1-conv weight with the 1/H of the H-mean into one (1, C) vector.
    v = weight.reshape(1, C).astype(jnp.float32) * jnp.float32(1.0 / H)
    b = bias.reshape(1).astype(jnp.float32)
    x3 = x.reshape(N, C, HW)    # metadata-only reshape; lane axis = H*W

    def kernel(x_ref, v_ref, b_ref, o_ref, acc_ref):
        # x_ref: (Nb, C, Hc*W) in x.dtype     v_ref: (1, C) f32
        # b_ref: (1,) f32 in SMEM             o_ref: (Nb, 1, W) f32
        # acc_ref: (Nb, W) f32 scratch, resident across the j (H-chunk) axis
        j = pl.program_id(1)

        @pl.when(j == 0)
        def _init():
            acc_ref[...] = jnp.zeros_like(acc_ref)

        v_row = v_ref[...]   # (1, C) == conv weight / H
        # C-reduction on the MXU: one (1, C) @ (C, Hc*W) dot per batch row.
        s = jnp.concatenate(
            [jnp.dot(v_row, x_ref[n].astype(jnp.float32),
                     preferred_element_type=jnp.float32)
             for n in range(Nb)],
            axis=0)                                     # (Nb, Hc*W)
        # Fold the Hc h-rows living in the lane axis down to W (partial H-sum).
        r = s[:, 0:W]
        for h in range(1, Hc):
            r = r + s[:, h * W:(h + 1) * W]
        acc_ref[...] += r

        @pl.when(j == n_h_steps - 1)
        def _finalize():
            y = acc_ref[...] + b_ref[0]
            o_ref[:, 0, :] = (jax.nn.sigmoid(y) * 0.5).astype(o_ref.dtype)

    # Bounded VMEM budget: double-buffered (layout-padded) x block + slack.
    pad_c = -(-C // 8) * 8
    pad_l = -(-(Hc * W) // 128) * 128
    x_block_vmem = Nb * pad_c * pad_l * itemsize
    vmem_limit = int(min(64 << 20, max(16 << 20, 2 * x_block_vmem + (2 << 20))))

    out = pl.pallas_call(
        kernel,
        out_shape=jax.ShapeDtypeStruct((N, 1, W), jnp.float32),
        grid=(N // Nb, n_h_steps),
        in_specs=[
            pl.BlockSpec((Nb, C, Hc * W), lambda i, j: (i, 0, j)),
            pl.BlockSpec((1, C), lambda i, j: (0, 0)),
            pl.BlockSpec(memory_space=pltpu.MemorySpace.SMEM),
        ],
        out_specs=pl.BlockSpec((Nb, 1, W), lambda i, j: (i, 0, 0)),
        scratch_shapes=[pltpu.VMEM((Nb, W), jnp.float32)],
        compiler_params=pltpu.CompilerParams(
            dimension_semantics=("parallel", "arbitrary"),
            vmem_limit_bytes=vmem_limit,
        ),
    )(x3, v, b)

    return out


def _reference(x, weight, bias):
    # Plain-JAX reference for verification.
    w = weight.reshape(1, -1)                                      # (1, C)
    conv = jnp.einsum('nchw,oc->nohw', x, w) + bias.reshape(1, 1, 1, 1)
    m = jnp.mean(conv, axis=2)                                     # (N, 1, W)
    return jax.nn.sigmoid(m) * 0.5


if __name__ == "__main__":
    key = jax.random.PRNGKey(0)
    k_x, k_w, k_b = jax.random.split(key, 3)

    N, C, H, W = 2, 29, 16, 16          # C=29 is fixed by the module
    x = jax.random.normal(k_x, (N, C, H, W), dtype=jnp.float32)

    # Deterministic PyTorch-style Conv2d init: U(-1/sqrt(fan_in), 1/sqrt(fan_in))
    fan_in = C * 1 * 1
    bound = 1.0 / (fan_in ** 0.5)
    weight = jax.random.uniform(k_w, (1, C, 1, 1), minval=-bound, maxval=bound,
                                dtype=jnp.float32)
    bias = jax.random.uniform(k_b, (1,), minval=-bound, maxval=bound,
                              dtype=jnp.float32)

    out = only_distance2ratio_forward(x, weight, bias)
    out = jax.block_until_ready(out)

    ref = _reference(x, weight, bias)
    assert out.shape == (N, 1, W), out.shape
    assert jnp.allclose(out, ref, atol=1e-5, rtol=1e-5), \
        float(jnp.max(jnp.abs(out - ref)))

    print("KERNEL_OK")
</pallas_src>

<mosaic_0001>
module attributes {stable_mosaic.version = 11 : i64} {
  func.func @kernel(%arg0: i32, %arg1: i32, %arg2: memref<2x29x256xf32, #tpu.memory_space<vmem>>, %arg3: memref<1x29xf32, #tpu.memory_space<vmem>>, %arg4: memref<1xf32, #tpu.memory_space<smem>>, %arg5: memref<2x1x16xf32, #tpu.memory_space<vmem>>, %arg6: memref<2x16xf32, #tpu.memory_space<vmem>>) attributes {dimension_semantics = [#tpu.dimension_semantics<parallel>, #tpu.dimension_semantics<arbitrary>], iteration_bounds = array<i64: 1, 1>, scalar_prefetch = 0 : i64, scratch_operands = 1 : i64, tpu.core_type = #tpu.core_type<tc>, window_params = [{transform_indices = @transform_0, window_bounds = array<i64: 2, 29, 256>}, {pipeline_mode = #tpu.pipeline_mode<synchronous>, transform_indices = @transform_1, window_bounds = array<i64: 1, 29>}, {transform_indices = @transform_2, window_bounds = array<i64: 1>}, {transform_indices = @transform_3, window_bounds = array<i64: 2, 1, 16>}]} {
    %c0_i32 = arith.constant 0 : i32
    %0 = arith.cmpi eq, %arg1, %c0_i32 : i32
    %1 = arith.extui %0 : i1 to i32
    %c0_i32_0 = arith.constant 0 : i32
    %2 = arith.cmpi ne, %1, %c0_i32_0 : i32
    scf.if %2 {
      %cst_14 = arith.constant 0.000000e+00 : f32
      %48 = vector.broadcast %cst_14 : f32 to vector<2x16xf32>
      %c0_15 = arith.constant 0 : index
      %c0_16 = arith.constant 0 : index
      %49 = vector.load %arg6[%c0_15, %c0_16] : memref<2x16xf32, #tpu.memory_space<vmem>>, vector<2x16xf32>
      tpu.vector_store %arg6[%c0_15, %c0_16], %48 {strides = array<i32>} : memref<2x16xf32, #tpu.memory_space<vmem>>, vector<2x16xf32>,
    } else {
    }
    %c0 = arith.constant 0 : index
    %c0_1 = arith.constant 0 : index
    %3 = vector.load %arg3[%c0, %c0_1] : memref<1x29xf32, #tpu.memory_space<vmem>>, vector<1x29xf32>
    %c0_2 = arith.constant 0 : index
    %c0_3 = arith.constant 0 : index
    %c0_4 = arith.constant 0 : index
    %4 = vector.load %arg2[%c0_2, %c0_3, %c0_4] : memref<2x29x256xf32, #tpu.memory_space<vmem>>, vector<1x29x256xf32>
    %5 = vector.shape_cast %4 : vector<1x29x256xf32> to vector<29x256xf32>
    %cst = arith.constant dense<0.000000e+00> : vector<1x256xf32>
    %6 = tpu.matmul %3, %5, %cst {dimension_numbers = #tpu.dot_dimension_numbers<[1], [0], [0], [1], [0, 0, 1, 1], [], []>} : vector<1x29xf32>, vector<29x256xf32>, vector<1x256xf32> -> vector<1x256xf32>
    %c1 = arith.constant 1 : index
    %c0_5 = arith.constant 0 : index
    %c0_6 = arith.constant 0 : index
    %7 = vector.load %arg2[%c1, %c0_5, %c0_6] : memref<2x29x256xf32, #tpu.memory_space<vmem>>, vector<1x29x256xf32>
    %8 = vector.shape_cast %7 : vector<1x29x256xf32> to vector<29x256xf32>
    %cst_7 = arith.constant dense<0.000000e+00> : vector<1x256xf32>
    %9 = tpu.matmul %3, %8, %cst_7 {dimension_numbers = #tpu.dot_dimension_numbers<[1], [0], [0], [1], [0, 0, 1, 1], [], []>} : vector<1x29xf32>, vector<29x256xf32>, vector<1x256xf32> -> vector<1x256xf32>
    %10 = tpu.concatenate %6, %9 in 0 : vector<1x256xf32>, vector<1x256xf32> -> vector<2x256xf32>
    %11 = vector.extract_strided_slice %10 {offsets = [0, 0], sizes = [2, 16], strides = [1, 1]} : vector<2x256xf32> to vector<2x16xf32>
    %12 = vector.extract_strided_slice %10 {offsets = [0, 16], sizes = [2, 16], strides = [1, 1]} : vector<2x256xf32> to vector<2x16xf32>
    %13 = arith.addf %11, %12 : vector<2x16xf32>
    %14 = vector.extract_strided_slice %10 {offsets = [0, 32], sizes = [2, 16], strides = [1, 1]} : vector<2x256xf32> to vector<2x16xf32>
    %15 = arith.addf %13, %14 : vector<2x16xf32>
    %16 = vector.extract_strided_slice %10 {offsets = [0, 48], sizes = [2, 16], strides = [1, 1]} : vector<2x256xf32> to vector<2x16xf32>
    %17 = arith.addf %15, %16 : vector<2x16xf32>
    %18 = vector.extract_strided_slice %10 {offsets = [0, 64], sizes = [2, 16], strides = [1, 1]} : vector<2x256xf32> to vector<2x16xf32>
    %19 = arith.addf %17, %18 : vector<2x16xf32>
    %20 = vector.extract_strided_slice %10 {offsets = [0, 80], sizes = [2, 16], strides = [1, 1]} : vector<2x256xf32> to vector<2x16xf32>
    %21 = arith.addf %19, %20 : vector<2x16xf32>
    %22 = vector.extract_strided_slice %10 {offsets = [0, 96], sizes = [2, 16], strides = [1, 1]} : vector<2x256xf32> to vector<2x16xf32>
    %23 = arith.addf %21, %22 : vector<2x16xf32>
    %24 = vector.extract_strided_slice %10 {offsets = [0, 112], sizes = [2, 16], strides = [1, 1]} : vector<2x256xf32> to vector<2x16xf32>
    %25 = arith.addf %23, %24 : vector<2x16xf32>
    %26 = vector.extract_strided_slice %10 {offsets = [0, 128], sizes = [2, 16], strides = [1, 1]} : vector<2x256xf32> to vector<2x16xf32>
    %27 = arith.addf %25, %26 : vector<2x16xf32>
    %28 = vector.extract_strided_slice %10 {offsets = [0, 144], sizes = [2, 16], strides = [1, 1]} : vector<2x256xf32> to vector<2x16xf32>
    %29 = arith.addf %27, %28 : vector<2x16xf32>
    %30 = vector.extract_strided_slice %10 {offsets = [0, 160], sizes = [2, 16], strides = [1, 1]} : vector<2x256xf32> to vector<2x16xf32>
    %31 = arith.addf %29, %30 : vector<2x16xf32>
    %32 = vector.extract_strided_slice %10 {offsets = [0, 176], sizes = [2, 16], strides = [1, 1]} : vector<2x256xf32> to vector<2x16xf32>
    %33 = arith.addf %31, %32 : vector<2x16xf32>
    %34 = vector.extract_strided_slice %10 {offsets = [0, 192], sizes = [2, 16], strides = [1, 1]} : vector<2x256xf32> to vector<2x16xf32>
    %35 = arith.addf %33, %34 : vector<2x16xf32>
    %36 = vector.extract_strided_slice %10 {offsets = [0, 208], sizes = [2, 16], strides = [1, 1]} : vector<2x256xf32> to vector<2x16xf32>
    %37 = arith.addf %35, %36 : vector<2x16xf32>
    %38 = vector.extract_strided_slice %10 {offsets = [0, 224], sizes = [2, 16], strides = [1, 1]} : vector<2x256xf32> to vector<2x16xf32>
    %39 = arith.addf %37, %38 : vector<2x16xf32>
    %40 = vector.extract_strided_slice %10 {offsets = [0, 240], sizes = [2, 16], strides = [1, 1]} : vector<2x256xf32> to vector<2x16xf32>
    %41 = arith.addf %39, %40 : vector<2x16xf32>
    %c0_8 = arith.constant 0 : index
    %c0_9 = arith.constant 0 : index
    %42 = vector.load %arg6[%c0_8, %c0_9] : memref<2x16xf32, #tpu.memory_space<vmem>>, vector<2x16xf32>
    %43 = arith.addf %42, %41 : vector<2x16xf32>
    %c0_10 = arith.constant 0 : index
    %c0_11 = arith.constant 0 : index
    %44 = vector.load %arg6[%c0_10, %c0_11] : memref<2x16xf32, #tpu.memory_space<vmem>>, vector<2x16xf32>
    tpu.vector_store %arg6[%c0_10, %c0_11], %43 {strides = array<i32>} : memref<2x16xf32, #tpu.memory_space<vmem>>, vector<2x16xf32>,
    %c0_i32_12 = arith.constant 0 : i32
    %45 = arith.cmpi eq, %arg1, %c0_i32_12 : i32
    %46 = arith.extui %45 : i1 to i32
    %c0_i32_13 = arith.constant 0 : i32
    %47 = arith.cmpi ne, %46, %c0_i32_13 : i32
    scf.if %47 {
      %c0_14 = arith.constant 0 : index
      %c0_15 = arith.constant 0 : index
      %48 = vector.load %arg6[%c0_14, %c0_15] : memref<2x16xf32, #tpu.memory_space<vmem>>, vector<2x16xf32>
      %c0_16 = arith.constant 0 : index
      %49 = memref.load %arg4[%c0_16] : memref<1xf32, #tpu.memory_space<smem>>
      %50 = vector.broadcast %49 : f32 to vector<2x16xf32>
      %51 = arith.addf %48, %50 : vector<2x16xf32>
      %52 = arith.negf %51 : vector<2x16xf32>
      %53 = math.exp %52 : vector<2x16xf32>
      %cst_17 = arith.constant 1.000000e+00 : f32
      %54 = vector.broadcast %cst_17 : f32 to vector<2x16xf32>
      %55 = arith.addf %54, %53 : vector<2x16xf32>
      %56 = arith.divf %54, %55 : vector<2x16xf32>
      %cst_18 = arith.constant 5.000000e-01 : f32
      %57 = vector.broadcast %cst_18 : f32 to vector<2x16xf32>
      %58 = arith.mulf %56, %57 : vector<2x16xf32>
      %c0_19 = arith.constant 0 : index
      %c0_20 = arith.constant 0 : index
      %c0_21 = arith.constant 0 : index
      %59 = vector.load %arg5[%c0_19, %c0_20, %c0_21] : memref<2x1x16xf32, #tpu.memory_space<vmem>>, vector<2x1x16xf32>
      %60 = vector.shape_cast %59 : vector<2x1x16xf32> to vector<2x16xf32>
      %61 = vector.shape_cast %58 : vector<2x16xf32> to vector<2x1x16xf32>
      tpu.vector_store %arg5[%c0_19, %c0_20, %c0_21], %61 {strides = array<i32>} : memref<2x1x16xf32, #tpu.memory_space<vmem>>, vector<2x1x16xf32>,
    } else {
    }
    return
  }
  func.func @transform_0(%arg0: i32, %arg1: i32) -> (i32, i32, i32) {
    %c0_i32 = arith.constant 0 : i32
    %c0_i32_0 = arith.constant 0 : i32
    return %arg0, %c0_i32, %arg1 : i32, i32, i32
  }
  func.func @transform_1(%arg0: i32, %arg1: i32) -> (i32, i32) {
    %c0_i32 = arith.constant 0 : i32
    %c0_i32_0 = arith.constant 0 : i32
    %c0_i32_1 = arith.constant 0 : i32
    return %c0_i32, %c0_i32_0 : i32, i32
  }
  func.func @transform_2(%arg0: i32, %arg1: i32) -> i32 {
    %c0_i32 = arith.constant 0 : i32
    %c0_i32_0 = arith.constant 0 : i32
    return %c0_i32 : i32
  }
  func.func @transform_3(%arg0: i32, %arg1: i32) -> (i32, i32, i32) {
    %c0_i32 = arith.constant 0 : i32
    %c0_i32_0 = arith.constant 0 : i32
    %c0_i32_1 = arith.constant 0 : i32
    return %arg0, %c0_i32, %c0_i32_0 : i32, i32, i32
  }
}

</mosaic_0001>

<bundles_post_ra>
// kernel: tpu_custom_call.1
= control target key start
LH: loop header
LB: loop body
LE: loop exit
PB: predicated region body
PF: predicated region fallthrough
CT: control target
= control target key end

     0   :  { %vm35_vm0 = vcmask 1044480   ;;  %vm20_vm1 = vcmask 123904   ;;  %vm404_vm2 = vmmov 1   ;;  %v405_v12 = vmov 0.0   ;;  %s520_s0 = inlined_call_operand.vmem [shape: f32[2,29,256], index: 0, kind: input, shape index: {}]   ;;  %s521_s1 = inlined_call_operand.vmem [shape: f32[1,29], index: 1, kind: input, shape index: {}]   ;;  %s522_s2 = inlined_call_operand.<no memory space> [shape: f32[1], index: 2, kind: input, shape index: {}]   ;;  %s523_s3 = inlined_call_operand.hbm [shape: f32[2,1,16], index: 3, kind: output, shape index: {}]  }
   0x1   :  { %v333_v0 = vld [vmem:[%s520_s0 + $0x48] sm:$0xff]  ;;  %v335_v1 = vld [vmem:[%s520_s0 + $0x58] sm:$0xff]  ;;  %v332_v5 = vld [vmem:[%s520_s0 + $0x40] sm:$0xff]  ;;  %21 = vst.msk [vmem:[#allocation2] sm:$0x3] %vm20_vm1, %v405_v12  ;;  %192 = vmatprep.mubr.f32.mxu1 %v405_v12  ;;  %106 = vmatprep.mubr.f32.mxu0 %v405_v12 }
   0x2   :  { %v24_v2 = vld [vmem:[%s520_s0 + $0x8] sm:$0xff]  ;;  %v354_v3 = vpack.c.bf16 %v335_v1, %v333_v0  ;;  %v26_v4 = vld [vmem:[%s520_s0 + $0x18] sm:$0xff]  ;;  %v334_v6 = vld [vmem:[%s520_s0 + $0x50] sm:$0xff] }
   0x3   :  { %v344_v7 = vpack.c.bf16 %v26_v4, %v24_v2  ;;  %v356_v8 = vpack.c.bf16 %v334_v6, %v332_v5  ;;  %v23_v9 = vld [vmem:[%s520_s0] sm:$0xff]  ;;  %v25_v10 = vld [vmem:[%s520_s0 + $0x10] sm:$0xff]  ;;  %vm460_vm3 = vmpackc.low %vm35_vm0, %vm404_vm2 }
   0x4   :  { %355 = vmatprep.subr.bf16.mxu1 %v354_v3  ;;  %v346_v13 = vpack.c.bf16 %v25_v10, %v23_v9  ;;  %v337_v14 = vld [vmem:[%s520_s0 + $0x68] sm:$0xff]  ;;  %v339_v15 = vld [vmem:[%s520_s0 + $0x78] sm:$0x1f]  ;;  %v336_v19 = vld [vmem:[%s520_s0 + $0x60] sm:$0xff] }
   0x5   :  { %v28_v16 = vld [vmem:[%s520_s0 + $0x28] sm:$0xff]  ;;  %345 = vmatprep.subr.bf16.mxu0 %v344_v7  ;;  %357 = vmatpush1.bf16.msra.mxu1 %v356_v8  ;;  %v358_v17 = vpack.c.bf16 %v339_v15, %v337_v14  ;;  %v30_v18 = vld [vmem:[%s520_s0 + $0x38] sm:$0x1f]  ;;  %v338_v20 = vld [vmem:[%s520_s0 + $0x70] sm:$0x1f] }
   0x6   :  { %347 = vmatpush1.bf16.msra.mxu0 %v346_v13  ;;  %v348_v21 = vpack.c.bf16 %v30_v18, %v28_v16  ;;  %v361_v22 = vpack.c.bf16 %v338_v20, %v336_v19  ;;  %v27_v23 = vld [vmem:[%s520_s0 + $0x20] sm:$0xff]  ;;  %v29_v24 = vld [vmem:[%s520_s0 + $0x30] sm:$0x1f] }
   0x7   :  { %360 = vmatprep.subr.msk.bf16.mxu1 %vm460_vm3, %v358_v17  ;;  %v351_v25 = vpack.c.bf16 %v29_v24, %v27_v23 }
   0x8   :  { %9 = vsyncpa [#allocation5], 0  ;;  %350 = vmatprep.subr.msk.bf16.mxu0 %vm460_vm3, %v348_v21  ;;  %v22_v26 = vld [vmem:[%s521_s1] sm:$0x1]  ;;  %vm31_vm4 = vcmask 236544   ;;  %vm205_vm5 = vcmask 1040384   ;;  %v276_v2 = vstv %s522_s2  ;;  %v289_v10 = vlaneseq }
   0x9   :  { %363 = vmatpush1.bf16.msk.msra.mxu1 %vm460_vm3, %v361_v22  ;;  %s406_s0 = smov 80   ;;  %s407_s19 = smov 112   ;;  %v267_v63 = vld [vmem:[#allocation2] sm:$0x3]  ;;  %v413_v8 = vmov 1966171168  }
   0xa   :  { %353 = vmatpush1.bf16.msk.msra.mxu0 %vm460_vm3, %v351_v25  ;;  %s408_s1 = smov 64   ;;  %s409_s20 = smov 96   ;;  %v287_v9 = vunpack.c.l.s4 %v413_v8  ;;  %v290_v12 = vshrl.u32 %v289_v10, 7  ;;  %vm310_vm6 = vcmask 122880  }
   0xb   :  { %s410_s21 = smov 32   ;;  %s411_s22 = smov 48  }
   0xc   :  { %342 = vmatmul.mubr.msk.f32.vlgmr.msra.gmra.mrb[0].mxu1 %vm31_vm4, %v22_v26  ;;  %s412_s23 = smov 16   ;;  %v288_v11 = vunpack.c.0.s8 %v287_v9  ;;  %s414_s26 = smov [#allocation4]  }
   0xd   :  { %331 = vmatmul.mubr.msk.f32.vlgmr.msra.gmra.mrb[0].mxu0 %vm31_vm4, %v22_v26  ;;  %s318_s27 = sshll.u32 %s414_s26, 4  ;;  %s319_s27 = int_to_ptr.vmem [resolvable:$true] %s318_s27 }
   0xe   :  { %v291_v13 = vsub.s32 %v288_v11, %v290_v12  ;;  %s380_s2 = scalar_lea.vmem %s319_s27, 32  ;;  %p385_p1 = scmp.lt.s32.totalorder %s319_s27, %s319_s27 }
   0xf   :  { %p381_p0 = scmp.ne.s32.totalorder %s319_s27, %s380_s2  ;;  %p386_p2 = scmp.lt.s32.totalorder %s380_s2, %s380_s2 }
  0x11   :  { %p387_p3 = por %p386_p2, %p385_p1 }
  0x13   :  { %p388_p4 = pnand %p387_p3, %p381_p0 }
  0xdf   :  { %v194_v27 = vpop.f32.mrb[0].mxu1 }
  0xe0   :  { %v201_v28 = vrot.slane %v194_v27, 7  ;;  %v108_v29 = vpop.f32.mrb[0].mxu0  ;;  %v196_v30 = vpop.f32.mrb[1].mxu1 }
  0xe1   :  { %v202_v31 = vrot.slane %v196_v30, 7  ;;  %v110_v32 = vpop.f32.mrb[1].mxu0 }
  0xe2   :  { %v206_v33 = vsel %vm205_vm5, %v108_v29, %v201_v28 }
  0xe3   :  { %v207_v34 = vsel %vm205_vm5, %v110_v32, %v202_v31  ;;  %217 = vrot.lane.b32.xlu1 %v206_v33, %s406_s0  ;;  %209 = vrot.lane.b32.xlu0 %v206_v33, %s407_s19 }
  0xe7   :  { %221 = vrot.lane.b32.xlu1 %v206_v33, %s408_s1  ;;  %213 = vrot.lane.b32.xlu0 %v206_v33, %s409_s20 }
  0xeb   :  { %229 = vrot.lane.b32.xlu1 %v206_v33, %s410_s21  ;;  %225 = vrot.lane.b32.xlu0 %v206_v33, %s411_s22 }
  0xef   :  { %233 = vrot.lane.b32.xlu0 %v206_v33, %s412_s23  ;;  %239 = vrot.lane.b32.xlu1 %v207_v34, %s407_s19 }
  0xf3   :  { %243 = vrot.lane.b32.xlu0 %v207_v34, %s409_s20  ;;  %247 = vrot.lane.b32.xlu1 %v207_v34, %s406_s0 }
  0xf7   :  { %251 = vrot.lane.b32.xlu0 %v207_v34, %s408_s1  ;;  %255 = vrot.lane.b32.xlu1 %v207_v34, %s411_s22 }
  0xfb   :  { %259 = vrot.lane.b32.xlu0 %v207_v34, %s410_s21  ;;  %263 = vrot.lane.b32.xlu1 %v207_v34, %s412_s23 }
 0x155   :  { %v218_v35 = vpop.permute.xlu1 %217  ;;  %v210_v36 = vpop.permute.xlu0 %209 }
 0x156   :  { %v212_v37 = vadd.f32 %v210_v36, %v206_v33 }
 0x159   :  { %v222_v38 = vpop.permute.xlu1 %221  ;;  %v214_v39 = vpop.permute.xlu0 %213 }
 0x15a   :  { %v216_v40 = vadd.f32 %v214_v39, %v212_v37 }
 0x15c   :  { %v220_v41 = vadd.f32 %v218_v35, %v216_v40 }
 0x15d   :  { %v230_v42 = vpop.permute.xlu1 %229  ;;  %v226_v43 = vpop.permute.xlu0 %225 }
 0x15e   :  { %v224_v44 = vadd.f32 %v222_v38, %v220_v41 }
 0x160   :  { %v228_v45 = vadd.f32 %v226_v43, %v224_v44 }
 0x161   :  { %v234_v46 = vpop.permute.xlu0 %233  ;;  %v240_v47 = vpop.permute.xlu1 %239 }
 0x162   :  { %v232_v48 = vadd.f32 %v230_v42, %v228_v45 }
 0x164   :  { %v236_v49 = vadd.f32 %v234_v46, %v232_v48 }
 0x165   :  { %v244_v50 = vpop.permute.xlu0 %243  ;;  %v248_v52 = vpop.permute.xlu1 %247 }
 0x166   :  { %v237_v51 = vadd.f32 %v236_v49, %v207_v34 }
 0x168   :  { %v242_v53 = vadd.f32 %v240_v47, %v237_v51 }
 0x169   :  { %v252_v55 = vpop.permute.xlu0 %251  ;;  %v256_v57 = vpop.permute.xlu1 %255 }
 0x16a   :  { %v246_v54 = vadd.f32 %v244_v50, %v242_v53 }
 0x16c   :  { %v250_v56 = vadd.f32 %v248_v52, %v246_v54 }
 0x16d   :  { %v260_v60 = vpop.permute.xlu0 %259  ;;  %v264_v62 = vpop.permute.xlu1 %263 }
 0x16e   :  { %v254_v58 = vadd.f32 %v252_v55, %v250_v56 }
 0x170   :  { %v258_v59 = vadd.f32 %v256_v57, %v254_v58 }
 0x172   :  { %v262_v61 = vadd.f32 %v260_v60, %v258_v59 }
 0x174   :  { %v266_v0 = vadd.f32 %v264_v62, %v262_v61 }
 0x176   :  { %v268_v1 = vadd.f32 %v267_v63, %v266_v0 }
 0x178   :  { %270 = vst.msk [vmem:[#allocation2] sm:$0x3] %vm20_vm1, %v268_v1 }
 0x17f   :  { %v274_v3 = vld [vmem:[#allocation2] sm:$0x3] }
 0x180   :  { %v277_v4 = vadd.f32 %v276_v2, %v274_v3 }
 0x182   :  { %v343_v5 = vmul.f32 -1.442695, %v277_v4 }
 0x184   :  { %376 = vpow2.f32 %v343_v5 }
 0x18e   :  { %v377_v6 = vpop.eup %376 }
 0x18f   :  { %v281_v7 = vadd.f32 1.0, %v377_v6 }
 0x191   :  { %378 = vrcp.f32 %v281_v7 }
 0x19b   :  { %v379_v14 = vpop.eup %378 }
 0x19c   :  { %v284_v15 = vmul.f32 0.5, %v379_v14 }
 0x19e   :  { %v292_v16 = vrot.slane %v284_v15, %v291_v13 }
 0x1a0   :  { %v293_v17 = vcombine.high %v292_v16, %v292_v16  ;;  %v300_v18 = vrot.slane %v292_v16, %v291_v13 }
 0x1a2   :  { %v307_v19 = vrot.slane %v293_v17, %v291_v13  ;;  %311 = vst.msk [vmem:[#allocation4] sm:$0x1] %vm310_vm6, %v300_v18 }
 0x1a4   :  { %312 = vst.msk [vmem:[#allocation4 + $0x1] sm:$0x1] %vm310_vm6, %v307_v19 }
 0x1a5   :  { %391 = shalt.err (!%p388_p4)
}
 0x1a6   :  { %s392_s30 = scalar_lea.hbm %s523_s3, 32 }
 0x1a7   :  { %p393_p5 = scmp.ne.s32.totalorder %s523_s3, %s392_s30  ;;  %p396_p6 = scmp.lt.u32.totalorder %s392_s30, %s523_s3 }
 0x1a9   :  { %p398_p7 = pnand %p396_p6, %p393_p5 }
 0x1ab   :  { %401 = shalt.err (!%p398_p7)
}
 0x1ac   :  { %s415_s8 = smov 1  }
 0x1ad   :  { %324 = dma.vmem_to_hbm [thread:$0]  %s319_s27, 32, %s523_s3, [#allocation5], %s412_s23, %s412_s23, %s415_s8  }
 0x1ae   :  { %402 = dma.done.wait [#allocation5], 32  }
 0x1af   :  { %403 = vsyncadd [#allocation5], 4294967264 }
 0x1b0   :  { %328 = vsyncpa [#allocation5], 1 }

</bundles_post_ra>
